<compile_context>
chip_gen: v7x
topology: tpu7x:2x2x1
jax: 0.10.0
libtpu: 0.0.40
codegen_flags: <defaults>
</compile_context>

<pallas_src>
import functools

import jax
import jax.numpy as jnp
from jax import lax
from jax.experimental import pallas as pl
from jax.experimental.pallas import tpu as pltpu

EPS = 1e-12
_MIB = 1024 * 1024


def _cdiv(a, b):
    return -(-a // b)


def _vmem_capacity_bytes():
    """Physical per-core VMEM (trace-time query with safe fallbacks)."""
    try:
        return int(pltpu.get_tpu_info().vmem_capacity_bytes)
    except Exception:
        pass
    try:
        kind = jax.devices()[0].device_kind.lower()
        if "v7" in kind:
            return 64 * _MIB
        return 128 * _MIB
    except Exception:
        return 64 * _MIB


def _disentangle_kernel(homo_ref, hetero_ref, on_ref, off_ref,
                        hsum_ref, esum_ref, *,
                        true_b, bt, n,
                        mh, tm_h, mh_tiles,
                        me, tm_e, me_tiles,
                        m_tiles, use_gram,
                        mask_b, mask_mh, mask_me):
    b = pl.program_id(0)
    m = pl.program_id(1)

    def accumulate(in_ref, sum_ref, tm, true_m, tiles, ragged):
        def do():
            x = in_ref[...]
            if ragged:
                # mask the ragged M tail (undefined data past the array edge)
                it = lax.broadcasted_iota(jnp.int32, (1, tm, 1, 1), 1)
                x = jnp.where(m * tm + it < true_m, x, 0.0)
            s = jnp.sum(x, axis=1)                      # (bt, N, D)
            if tiles == 1:
                sum_ref[...] = s                        # single tile: assign
            else:
                @pl.when(m == 0)
                def _():                                # first tile: no RMW
                    sum_ref[...] = s

                @pl.when(m > 0)
                def _():
                    sum_ref[...] += s

        if tiles < m_tiles:
            # shorter input: index_map clamps its block (duplicate DMA is
            # skipped by Pallas) and the accumulation is skipped here.
            pl.when(m < tiles)(do)
        else:
            do()

    accumulate(homo_ref, hsum_ref, tm_h, mh, mh_tiles, mask_mh)
    accumulate(hetero_ref, esum_ref, tm_e, me, me_tiles, mask_me)

    def finalize():
        # mean over the TRUE (unmasked) M extents
        h = hsum_ref[...] * (1.0 / mh)
        e = esum_ref[...] * (1.0 / me)
        # F.normalize(p=2, dim=-1, eps=1e-12) == x * rsqrt(max(||x||^2, eps^2))
        h = h * lax.rsqrt(
            jnp.maximum(jnp.sum(h * h, axis=-1, keepdims=True), EPS * EPS))
        e = e * lax.rsqrt(
            jnp.maximum(jnp.sum(e * e, axis=-1, keepdims=True), EPS * EPS))
        if mask_b:
            # zero invalid (ragged-tail) batch rows so they contribute nothing
            bi = lax.broadcasted_iota(jnp.int32, (bt, 1, 1), 0)
            valid = (b * bt + bi) < true_b
            h = jnp.where(valid, h, 0.0)
            e = jnp.where(valid, e, 0.0)
        # normalize in place: cuts peak finalize VMEM (review item)
        hsum_ref[...] = h
        esum_ref[...] = e

        # diagonal of sim: rowwise dot(h_norm, e_norm) -> (bt, N, 1)
        diag = jnp.sum(hsum_ref[...] * esum_ref[...], axis=-1, keepdims=True)
        dsq = diag * diag
        on_part = jnp.sum(dsq)
        # PyTorch drops only the LAST flattened element per batch: sim[N-1,N-1]
        last_dsq = jnp.sum(dsq[:, n - 1:n, :])

        if use_gram:
            # ||sim||_F^2 == sum((Hn^T Hn) * (En^T En)); never builds (N, N)
            gh = lax.dot_general(
                hsum_ref[...], hsum_ref[...],
                dimension_numbers=(((1,), (1,)), ((0,), (0,))),
                preferred_element_type=jnp.float32)          # (bt, D, D)
            ge = lax.dot_general(
                esum_ref[...], esum_ref[...],
                dimension_numbers=(((1,), (1,)), ((0,), (0,))),
                preferred_element_type=jnp.float32)
            frob = jnp.sum(gh * ge)
        else:
            # batched (bt, N, N) similarity; last-dim contraction, no transpose
            sim = lax.dot_general(
                hsum_ref[...], esum_ref[...],
                dimension_numbers=(((2,), (2,)), ((0,), (0,))),
                preferred_element_type=jnp.float32)
            frob = jnp.sum(sim * sim)

        on_ref[...] = jnp.reshape(on_part, (1, 1, 1))
        off_ref[...] = jnp.reshape(frob - last_dsq, (1, 1, 1))

    if m_tiles == 1:
        finalize()
    else:
        pl.when(m == m_tiles - 1)(finalize)


def disentangle_loss(homo_feat, hetero_feat, loss_weight=0.2):
    """homo_feat: [B, Mh, N, D], hetero_feat: [B, Me, N, D]."""
    B, Mh, N, D = homo_feat.shape
    Be, Me, Ne, De = hetero_feat.shape
    assert (B, N, D) == (Be, Ne, De)

    homo_feat = homo_feat.astype(jnp.float32)
    hetero_feat = hetero_feat.astype(jnp.float32)

    # ---- trace-time tiling decisions ---------------------------------------
    vmem_phys = _vmem_capacity_bytes()
    if vmem_phys <= 64 * _MIB:          # v7x-class: 64 MiB VMEM, ~3.2 TB/s HBM
        target_block = 8 * _MIB
        vmem_cap = 52 * _MIB
        temp_budget = 8 * _MIB
    else:                               # v5e / v6e: 128 MiB physical VMEM
        target_block = 4 * _MIB
        vmem_cap = 100 * _MIB
        temp_budget = 16 * _MIB

    bytes_row = N * D * 4               # one (N, D) fp32 slice

    # Gram path only when it is both fewer MXU flops and a smaller temp.
    use_gram = N > 2 * D

    tm_cap = max(1, target_block // max(1, bytes_row))
    tm_h = min(Mh, tm_cap)
    tm_e = min(Me, tm_cap)

    per_b_bytes = max(tm_h, tm_e) * bytes_row
    if per_b_bytes <= target_block:
        bt = max(1, min(B, target_block // per_b_bytes))
    else:
        bt = 1
    # bound the finalize intermediate and the (bt, N, D) fp32 scratch pair
    if use_gram:
        bt = min(bt, max(1, temp_budget // max(1, 2 * D * D * 4)))
    else:
        bt = min(bt, max(1, temp_budget // max(1, N * N * 4)))
    bt = min(bt, max(1, (vmem_cap // 4) // max(1, 2 * N * D * 4)))
    bt = max(1, bt)

    def vmem_need(bt_, tmh_, tme_):
        blocks = 2 * bt_ * (tmh_ + tme_) * bytes_row     # 2 pipeline buffers
        scratch = 2 * bt_ * N * D * 4
        temps = 3 * bt_ * D * D * 4 if use_gram else 2 * bt_ * N * N * 4
        return blocks + scratch + temps + _MIB

    # shrink tiles if the estimate would not fit the per-generation cap
    while vmem_need(bt, tm_h, tm_e) > vmem_cap and max(tm_h, tm_e) > 1:
        if tm_h >= tm_e:
            tm_h = max(1, tm_h // 2)
        else:
            tm_e = max(1, tm_e // 2)
    while vmem_need(bt, tm_h, tm_e) > vmem_cap and bt > 1:
        bt = max(1, bt // 2)

    mh_tiles = _cdiv(Mh, tm_h)
    me_tiles = _cdiv(Me, tm_e)
    m_tiles = max(mh_tiles, me_tiles)
    nb = _cdiv(B, bt)

    mask_mh = (Mh % tm_h) != 0
    mask_me = (Me % tm_e) != 0
    mask_b = (B % bt) != 0

    need = vmem_need(bt, tm_h, tm_e)
    # never set the limit below the estimated need (review correctness item)
    vmem_limit = int(max(min(2 * need, vmem_cap), need, 32 * _MIB))

    # No host-side padding. Shorter-M input clamps its block index so Pallas
    # skips duplicate DMAs once it is exhausted.
    if mh_tiles == m_tiles:
        homo_idx = lambda b, m: (b, m, 0, 0)
    else:
        homo_idx = lambda b, m: (b, jnp.minimum(m, mh_tiles - 1), 0, 0)
    if me_tiles == m_tiles:
        het_idx = lambda b, m: (b, m, 0, 0)
    else:
        het_idx = lambda b, m: (b, jnp.minimum(m, me_tiles - 1), 0, 0)

    kernel = functools.partial(
        _disentangle_kernel,
        true_b=B, bt=bt, n=N,
        mh=Mh, tm_h=tm_h, mh_tiles=mh_tiles,
        me=Me, tm_e=tm_e, me_tiles=me_tiles,
        m_tiles=m_tiles, use_gram=use_gram,
        mask_b=mask_b, mask_mh=mask_mh, mask_me=mask_me)

    on_sums, off_sums = pl.pallas_call(
        kernel,
        out_shape=(jax.ShapeDtypeStruct((nb, 1, 1), jnp.float32),
                   jax.ShapeDtypeStruct((nb, 1, 1), jnp.float32)),
        grid_spec=pltpu.PrefetchScalarGridSpec(
            num_scalar_prefetch=0,
            grid=(nb, m_tiles),
            in_specs=[
                pl.BlockSpec((bt, tm_h, N, D), homo_idx),
                pl.BlockSpec((bt, tm_e, N, D), het_idx),
            ],
            out_specs=[
                pl.BlockSpec((1, 1, 1), lambda b, m: (b, 0, 0)),
                pl.BlockSpec((1, 1, 1), lambda b, m: (b, 0, 0)),
            ],
            scratch_shapes=[
                pltpu.VMEM((bt, N, D), jnp.float32),   # homo M-sum / h_norm
                pltpu.VMEM((bt, N, D), jnp.float32),   # hetero M-sum / e_norm
            ],
        ),
        compiler_params=pltpu.CompilerParams(
            # batch-group axis owns independent output blocks -> safe to shard
            # across TensorCores on 2-TC chips; M axis is the reduction.
            dimension_semantics=("parallel", "arbitrary"),
            vmem_limit_bytes=vmem_limit),
    )(homo_feat, hetero_feat)

    # Finalize with TRUE counts (masked elements contributed exactly zero).
    on_mean = jnp.sum(on_sums) / jnp.float32(B * N)
    off_mean = jnp.sum(off_sums) / jnp.float32(B * (N * N - 1))
    return loss_weight * (off_mean - 0.5 * on_mean)


def _reference(homo_feat, hetero_feat, loss_weight=0.2):
    h = homo_feat.mean(axis=1)
    e = hetero_feat.mean(axis=1)
    hn = h / jnp.maximum(jnp.linalg.norm(h, axis=-1, keepdims=True), EPS)
    en = e / jnp.maximum(jnp.linalg.norm(e, axis=-1, keepdims=True), EPS)
    sim = jnp.einsum('bnd,bmd->bnm', hn, en)
    on_diag = jnp.mean(jnp.diagonal(sim, axis1=1, axis2=2) ** 2)
    flat = sim.reshape(sim.shape[0], -1)[:, :-1]
    off_diag = jnp.mean(flat ** 2)
    return loss_weight * (off_diag - 0.5 * on_diag)


if __name__ == "__main__":
    key = jax.random.PRNGKey(0)
    k1, k2 = jax.random.split(key)
    B, M, N, D = 2, 4, 8, 32
    homo_feat = jax.random.normal(k1, (B, M, N, D), dtype=jnp.float32)
    hetero_feat = jax.random.normal(k2, (B, M, N, D), dtype=jnp.float32)

    loss = disentangle_loss(homo_feat, hetero_feat, loss_weight=0.2)
    jax.block_until_ready(loss)

    ref = _reference(homo_feat, hetero_feat, loss_weight=0.2)
    assert jnp.allclose(loss, ref, rtol=1e-5, atol=1e-6), (loss, ref)
    print("KERNEL_OK")
</pallas_src>

<mosaic_0001>
module attributes {stable_mosaic.version = 11 : i64} {
  func.func @_disentangle_kernel(%arg0: i32, %arg1: i32, %arg2: memref<2x4x8x32xf32, #tpu.memory_space<vmem>>, %arg3: memref<2x4x8x32xf32, #tpu.memory_space<vmem>>, %arg4: memref<1x1x1xf32, #tpu.memory_space<vmem>>, %arg5: memref<1x1x1xf32, #tpu.memory_space<vmem>>, %arg6: memref<2x8x32xf32, #tpu.memory_space<vmem>>, %arg7: memref<2x8x32xf32, #tpu.memory_space<vmem>>) attributes {dimension_semantics = [#tpu.dimension_semantics<parallel>, #tpu.dimension_semantics<arbitrary>], iteration_bounds = array<i64: 1, 1>, scalar_prefetch = 0 : i64, scratch_operands = 2 : i64, tpu.core_type = #tpu.core_type<tc>, window_params = [{transform_indices = @transform_0, window_bounds = array<i64: 2, 4, 8, 32>}, {transform_indices = @transform_1, window_bounds = array<i64: 2, 4, 8, 32>}, {transform_indices = @transform_2, window_bounds = array<i64: 1, 1, 1>}, {transform_indices = @transform_3, window_bounds = array<i64: 1, 1, 1>}]} {
    %c0 = arith.constant 0 : index
    %c0_0 = arith.constant 0 : index
    %c0_1 = arith.constant 0 : index
    %c0_2 = arith.constant 0 : index
    %0 = vector.load %arg2[%c0, %c0_0, %c0_1, %c0_2] : memref<2x4x8x32xf32, #tpu.memory_space<vmem>>, vector<2x4x8x32xf32>
    %cst = arith.constant dense<0.000000e+00> : vector<2x8x32xf32>
    %1 = vector.multi_reduction <add>, %0, %cst [1] : vector<2x4x8x32xf32> to vector<2x8x32xf32>
    %c0_3 = arith.constant 0 : index
    %c0_4 = arith.constant 0 : index
    %c0_5 = arith.constant 0 : index
    %2 = vector.load %arg6[%c0_3, %c0_4, %c0_5] : memref<2x8x32xf32, #tpu.memory_space<vmem>>, vector<2x8x32xf32>
    tpu.vector_store %arg6[%c0_3, %c0_4, %c0_5], %1 {strides = array<i32>} : memref<2x8x32xf32, #tpu.memory_space<vmem>>, vector<2x8x32xf32>,
    %c0_6 = arith.constant 0 : index
    %c0_7 = arith.constant 0 : index
    %c0_8 = arith.constant 0 : index
    %c0_9 = arith.constant 0 : index
    %3 = vector.load %arg3[%c0_6, %c0_7, %c0_8, %c0_9] : memref<2x4x8x32xf32, #tpu.memory_space<vmem>>, vector<2x4x8x32xf32>
    %cst_10 = arith.constant dense<0.000000e+00> : vector<2x8x32xf32>
    %4 = vector.multi_reduction <add>, %3, %cst_10 [1] : vector<2x4x8x32xf32> to vector<2x8x32xf32>
    %c0_11 = arith.constant 0 : index
    %c0_12 = arith.constant 0 : index
    %c0_13 = arith.constant 0 : index
    %5 = vector.load %arg7[%c0_11, %c0_12, %c0_13] : memref<2x8x32xf32, #tpu.memory_space<vmem>>, vector<2x8x32xf32>
    tpu.vector_store %arg7[%c0_11, %c0_12, %c0_13], %4 {strides = array<i32>} : memref<2x8x32xf32, #tpu.memory_space<vmem>>, vector<2x8x32xf32>,
    %c0_14 = arith.constant 0 : index
    %c0_15 = arith.constant 0 : index
    %c0_16 = arith.constant 0 : index
    %6 = vector.load %arg6[%c0_14, %c0_15, %c0_16] : memref<2x8x32xf32, #tpu.memory_space<vmem>>, vector<2x8x32xf32>
    %cst_17 = arith.constant 2.500000e-01 : f32
    %7 = vector.broadcast %cst_17 : f32 to vector<2x8x32xf32>
    %8 = arith.mulf %6, %7 : vector<2x8x32xf32>
    %c0_18 = arith.constant 0 : index
    %c0_19 = arith.constant 0 : index
    %c0_20 = arith.constant 0 : index
    %9 = vector.load %arg7[%c0_18, %c0_19, %c0_20] : memref<2x8x32xf32, #tpu.memory_space<vmem>>, vector<2x8x32xf32>
    %cst_21 = arith.constant 2.500000e-01 : f32
    %10 = vector.broadcast %cst_21 : f32 to vector<2x8x32xf32>
    %11 = arith.mulf %9, %10 : vector<2x8x32xf32>
    %12 = arith.mulf %8, %8 : vector<2x8x32xf32>
    %cst_22 = arith.constant dense<0.000000e+00> : vector<2x8xf32>
    %13 = vector.multi_reduction <add>, %12, %cst_22 [2] : vector<2x8x32xf32> to vector<2x8xf32>
    %14 = vector.shape_cast %13 : vector<2x8xf32> to vector<2x8x1xf32>
    %cst_23 = arith.constant 1.000000e-24 : f32
    %15 = vector.broadcast %cst_23 : f32 to vector<2x8x1xf32>
    %16 = arith.maximumf %14, %15 : vector<2x8x1xf32>
    %17 = math.rsqrt %16 : vector<2x8x1xf32>
    %18 = vector.broadcast %17 : vector<2x8x1xf32> to vector<2x8x32xf32>
    %19 = arith.mulf %8, %18 : vector<2x8x32xf32>
    %20 = arith.mulf %11, %11 : vector<2x8x32xf32>
    %cst_24 = arith.constant dense<0.000000e+00> : vector<2x8xf32>
    %21 = vector.multi_reduction <add>, %20, %cst_24 [2] : vector<2x8x32xf32> to vector<2x8xf32>
    %22 = vector.shape_cast %21 : vector<2x8xf32> to vector<2x8x1xf32>
    %cst_25 = arith.constant 1.000000e-24 : f32
    %23 = vector.broadcast %cst_25 : f32 to vector<2x8x1xf32>
    %24 = arith.maximumf %22, %23 : vector<2x8x1xf32>
    %25 = math.rsqrt %24 : vector<2x8x1xf32>
    %26 = vector.broadcast %25 : vector<2x8x1xf32> to vector<2x8x32xf32>
    %27 = arith.mulf %11, %26 : vector<2x8x32xf32>
    %c0_26 = arith.constant 0 : index
    %c0_27 = arith.constant 0 : index
    %c0_28 = arith.constant 0 : index
    %28 = vector.load %arg6[%c0_26, %c0_27, %c0_28] : memref<2x8x32xf32, #tpu.memory_space<vmem>>, vector<2x8x32xf32>
    tpu.vector_store %arg6[%c0_26, %c0_27, %c0_28], %19 {strides = array<i32>} : memref<2x8x32xf32, #tpu.memory_space<vmem>>, vector<2x8x32xf32>,
    %c0_29 = arith.constant 0 : index
    %c0_30 = arith.constant 0 : index
    %c0_31 = arith.constant 0 : index
    %29 = vector.load %arg7[%c0_29, %c0_30, %c0_31] : memref<2x8x32xf32, #tpu.memory_space<vmem>>, vector<2x8x32xf32>
    tpu.vector_store %arg7[%c0_29, %c0_30, %c0_31], %27 {strides = array<i32>} : memref<2x8x32xf32, #tpu.memory_space<vmem>>, vector<2x8x32xf32>,
    %c0_32 = arith.constant 0 : index
    %c0_33 = arith.constant 0 : index
    %c0_34 = arith.constant 0 : index
    %30 = vector.load %arg6[%c0_32, %c0_33, %c0_34] : memref<2x8x32xf32, #tpu.memory_space<vmem>>, vector<2x8x32xf32>
    %c0_35 = arith.constant 0 : index
    %c0_36 = arith.constant 0 : index
    %c0_37 = arith.constant 0 : index
    %31 = vector.load %arg7[%c0_35, %c0_36, %c0_37] : memref<2x8x32xf32, #tpu.memory_space<vmem>>, vector<2x8x32xf32>
    %32 = arith.mulf %30, %31 : vector<2x8x32xf32>
    %cst_38 = arith.constant dense<0.000000e+00> : vector<2x8xf32>
    %33 = vector.multi_reduction <add>, %32, %cst_38 [2] : vector<2x8x32xf32> to vector<2x8xf32>
    %34 = vector.shape_cast %33 : vector<2x8xf32> to vector<2x8x1xf32>
    %35 = arith.mulf %34, %34 : vector<2x8x1xf32>
    %36 = vector.shape_cast %35 : vector<2x8x1xf32> to vector<1x2x8x1xf32>
    %cst_39 = arith.constant dense<0.000000e+00> : vector<1xf32>
    %37 = vector.multi_reduction <add>, %36, %cst_39 [1, 2, 3] : vector<1x2x8x1xf32> to vector<1xf32>
    %38 = vector.shape_cast %37 : vector<1xf32> to vector<1x1x1x1xf32>
    %39 = vector.extract %38[0, 0, 0, 0] : f32 from vector<1x1x1x1xf32>
    %40 = vector.extract_strided_slice %35 {offsets = [0, 7, 0], sizes = [2, 1, 1], strides = [1, 1, 1]} : vector<2x8x1xf32> to vector<2x1x1xf32>
    %41 = vector.shape_cast %40 : vector<2x1x1xf32> to vector<1x2x1x1xf32>
    %cst_40 = arith.constant dense<0.000000e+00> : vector<1xf32>
    %42 = vector.multi_reduction <add>, %41, %cst_40 [1, 2, 3] : vector<1x2x1x1xf32> to vector<1xf32>
    %43 = vector.shape_cast %42 : vector<1xf32> to vector<1x1x1x1xf32>
    %44 = vector.extract %43[0, 0, 0, 0] : f32 from vector<1x1x1x1xf32>
    %c0_41 = arith.constant 0 : index
    %c0_42 = arith.constant 0 : index
    %c0_43 = arith.constant 0 : index
    %45 = vector.load %arg6[%c0_41, %c0_42, %c0_43] : memref<2x8x32xf32, #tpu.memory_space<vmem>>, vector<2x8x32xf32>
    %c0_44 = arith.constant 0 : index
    %c0_45 = arith.constant 0 : index
    %c0_46 = arith.constant 0 : index
    %46 = vector.load %arg7[%c0_44, %c0_45, %c0_46] : memref<2x8x32xf32, #tpu.memory_space<vmem>>, vector<2x8x32xf32>
    %cst_47 = arith.constant dense<0.000000e+00> : vector<2x8x8xf32>
    %47 = tpu.matmul %45, %46, %cst_47 {dimension_numbers = #tpu.dot_dimension_numbers<[2], [2], [1], [1], [0, 0, 0, 1, 1, 1], [0], [0]>} : vector<2x8x32xf32>, vector<2x8x32xf32>, vector<2x8x8xf32> -> vector<2x8x8xf32>
    %48 = arith.mulf %47, %47 : vector<2x8x8xf32>
    %49 = vector.shape_cast %48 : vector<2x8x8xf32> to vector<1x2x8x8xf32>
    %cst_48 = arith.constant dense<0.000000e+00> : vector<1xf32>
    %50 = vector.multi_reduction <add>, %49, %cst_48 [1, 2, 3] : vector<1x2x8x8xf32> to vector<1xf32>
    %51 = vector.shape_cast %50 : vector<1xf32> to vector<1x1x1x1xf32>
    %52 = vector.extract %51[0, 0, 0, 0] : f32 from vector<1x1x1x1xf32>
    %53 = vector.broadcast %39 : f32 to vector<1x1x1xf32>
    %c0_49 = arith.constant 0 : index
    %c0_50 = arith.constant 0 : index
    %c0_51 = arith.constant 0 : index
    %54 = vector.load %arg4[%c0_49, %c0_50, %c0_51] : memref<1x1x1xf32, #tpu.memory_space<vmem>>, vector<1x1x1xf32>
    tpu.vector_store %arg4[%c0_49, %c0_50, %c0_51], %53 {strides = array<i32>} : memref<1x1x1xf32, #tpu.memory_space<vmem>>, vector<1x1x1xf32>,
    %55 = arith.subf %52, %44 : f32
    %56 = vector.broadcast %55 : f32 to vector<1x1x1xf32>
    %c0_52 = arith.constant 0 : index
    %c0_53 = arith.constant 0 : index
    %c0_54 = arith.constant 0 : index
    %57 = vector.load %arg5[%c0_52, %c0_53, %c0_54] : memref<1x1x1xf32, #tpu.memory_space<vmem>>, vector<1x1x1xf32>
    tpu.vector_store %arg5[%c0_52, %c0_53, %c0_54], %56 {strides = array<i32>} : memref<1x1x1xf32, #tpu.memory_space<vmem>>, vector<1x1x1xf32>,
    return
  }
  func.func @transform_0(%arg0: i32, %arg1: i32) -> (i32, i32, i32, i32) {
    %c0_i32 = arith.constant 0 : i32
    %c0_i32_0 = arith.constant 0 : i32
    %c0_i32_1 = arith.constant 0 : i32
    return %arg0, %arg1, %c0_i32, %c0_i32_0 : i32, i32, i32, i32
  }
  func.func @transform_1(%arg0: i32, %arg1: i32) -> (i32, i32, i32, i32) {
    %c0_i32 = arith.constant 0 : i32
    %c0_i32_0 = arith.constant 0 : i32
    %c0_i32_1 = arith.constant 0 : i32
    return %arg0, %arg1, %c0_i32, %c0_i32_0 : i32, i32, i32, i32
  }
  func.func @transform_2(%arg0: i32, %arg1: i32) -> (i32, i32, i32) {
    %c0_i32 = arith.constant 0 : i32
    %c0_i32_0 = arith.constant 0 : i32
    %c0_i32_1 = arith.constant 0 : i32
    return %arg0, %c0_i32, %c0_i32_0 : i32, i32, i32
  }
  func.func @transform_3(%arg0: i32, %arg1: i32) -> (i32, i32, i32) {
    %c0_i32 = arith.constant 0 : i32
    %c0_i32_0 = arith.constant 0 : i32
    %c0_i32_1 = arith.constant 0 : i32
    return %arg0, %c0_i32, %c0_i32_0 : i32, i32, i32
  }
}

</mosaic_0001>

<bundles_post_ra>
// kernel: tpu_custom_call.1
= control target key start
LH: loop header
LB: loop body
LE: loop exit
PB: predicated region body
PF: predicated region fallthrough
CT: control target
= control target key end

     0   :  { %9 = vsyncpa [#allocation5], 0  ;;  %s630_s0 = inlined_call_operand.hbm [shape: f32[2,4,8,32], index: 0, kind: input, shape index: {}]   ;;  %s631_s1 = inlined_call_operand.hbm [shape: f32[2,4,8,32], index: 1, kind: input, shape index: {}]   ;;  %s632_s2 = inlined_call_operand.hbm [shape: f32[1,1,1], index: 2, kind: output, shape index: {0}]   ;;  %s633_s3 = inlined_call_operand.hbm [shape: f32[1,1,1], index: 3, kind: output, shape index: {1}]  }
   0x1   :  { %10 = vsyncpa [#allocation8], 0 }
   0x2   :  { %11 = vsyncpa [#allocation6], 0 }
   0x3   :  { %12 = vsyncpa [#allocation11], 0  ;;  %s516_s12 = smov [#allocation4]   ;;  %s420_s16 = scalar_lea.hbm %s630_s0, 1024 }
   0x4   :  { %s18_s13 = sshll.u32 %s516_s12, 4  ;;  %p421_p0 = scmp.ne.s32.totalorder %s630_s0, %s420_s16  ;;  %s19_s13 = int_to_ptr.vmem [resolvable:$true] %s18_s13 }
   0x5   :  { %p424_p1 = scmp.lt.u32.totalorder %s420_s16, %s630_s0 }
   0x7   :  { %p426_p2 = pnand %p424_p1, %p421_p0 }
   0x9   :  { %429 = shalt.err (!%p426_p2)
}
   0xa   :  { %s430_s21 = scalar_lea.vmem %s19_s13, 1024  ;;  %p435_p4 = scmp.lt.s32.totalorder %s19_s13, %s19_s13 }
   0xb   :  { %p431_p3 = scmp.ne.s32.totalorder %s19_s13, %s430_s21  ;;  %p436_p5 = scmp.lt.s32.totalorder %s430_s21, %s430_s21 }
   0xd   :  { %p437_p6 = por %p436_p5, %p435_p4 }
   0xf   :  { %p438_p7 = pnand %p437_p6, %p431_p3 }
  0x11   :  { %441 = shalt.err (!%p438_p7)
}
  0x12   :  { %s517_s22 = smov 128   ;;  %s518_s23 = smov 8  }
  0x13   :  { %24 = dma.hbm_to_vmem [thread:$0]  %s630_s0, 1024, %s19_s13, [#allocation5], %s517_s22, %s517_s22, %s518_s23  }
  0x14   :  { %s519_s26 = smov [#allocation7]   ;;  %s442_s30 = scalar_lea.hbm %s631_s1, 1024 }
  0x15   :  { %s30_s27 = sshll.u32 %s519_s26, 4  ;;  %p443_p8 = scmp.ne.s32.totalorder %s631_s1, %s442_s30  ;;  %s31_s27 = int_to_ptr.vmem [resolvable:$true] %s30_s27 }
  0x16   :  { %p446_p9 = scmp.lt.u32.totalorder %s442_s30, %s631_s1 }
  0x18   :  { %p448_p10 = pnand %p446_p9, %p443_p8 }
  0x1a   :  { %451 = shalt.err (!%p448_p10)
}
  0x1b   :  { %s452_s8 = scalar_lea.vmem %s31_s27, 1024  ;;  %p457_p12 = scmp.lt.s32.totalorder %s31_s27, %s31_s27 }
  0x1c   :  { %p453_p11 = scmp.ne.s32.totalorder %s31_s27, %s452_s8  ;;  %p458_p13 = scmp.lt.s32.totalorder %s452_s8, %s452_s8 }
  0x1e   :  { %p459_p0 = por %p458_p13, %p457_p12 }
  0x20   :  { %p460_p1 = pnand %p459_p0, %p453_p11 }
  0x22   :  { %463 = shalt.err (!%p460_p1)
}
  0x23   :  { %36 = dma.hbm_to_vmem [thread:$0]  %s631_s1, 1024, %s31_s27, [#allocation8], %s517_s22, %s517_s22, %s518_s23  }
  0x24   :  { %508 = dma.done.wait [#allocation5], 1024  }
  0x25   :  { %509 = vsyncadd [#allocation5], 4294966272 }
  0x26   :  { %510 = dma.done.wait [#allocation8], 1024  }
  0x27   :  { %511 = vsyncadd [#allocation8], 4294966272  ;;  %vm51_vm0 = vcmask 261120   ;;  %v68_v0 = vld [vmem:[#allocation7] sm:$0xff]  ;;  %v69_v1 = vld [vmem:[#allocation7 + $0x8] sm:$0xff]  ;;  %v520_v60 = vmov 0.0  }
  0x28   :  { %v70_v2 = vld [vmem:[#allocation7 + $0x10] sm:$0xff]  ;;  %v71_v3 = vld [vmem:[#allocation7 + $0x18] sm:$0xff]  ;;  %v76_v4 = vsel %vm51_vm0, %v68_v0, 0.0  ;;  %v77_v5 = vsel %vm51_vm0, %v69_v1, 0.0  ;;  %v43_v7 = vld [vmem:[#allocation4] sm:$0xff]  ;;  %388 = vmatprep.subr.mxu0 %v520_v60  ;;  %393 = vmatprep.subr.mxu1 %v520_v60  ;;  %vm521_vm1 = vmmov 0  }
  0x29   :  { %v79_v6 = vsel %vm51_vm0, %v70_v2, 0.0  ;;  %v44_v8 = vld [vmem:[#allocation4 + $0x8] sm:$0xff]  ;;  %v78_v9 = vadd.f32 %v77_v5, %v76_v4  ;;  %v45_v10 = vld [vmem:[#allocation4 + $0x10] sm:$0xff]  ;;  %v46_v11 = vld [vmem:[#allocation4 + $0x18] sm:$0xff]  ;;  %v52_v12 = vsel %vm51_vm0, %v43_v7, 0.0  ;;  %v81_v15 = vsel %vm51_vm0, %v71_v3, 0.0  ;;  %390 = vmatprep.mubr.msk.f32.mxu0 %vm521_vm1, %v520_v60  ;;  %395 = vmatprep.mubr.msk.f32.mxu1 %vm521_vm1, %v520_v60 }
  0x2a   :  { %v53_v13 = vsel %vm51_vm0, %v44_v8, 0.0  ;;  %v72_v14 = vld [vmem:[#allocation7 + $0x20] sm:$0xff]  ;;  %v55_v17 = vsel %vm51_vm0, %v45_v10, 0.0  ;;  %v73_v18 = vld [vmem:[#allocation7 + $0x28] sm:$0xff]  ;;  %v74_v19 = vld [vmem:[#allocation7 + $0x30] sm:$0xff]  ;;  %v57_v23 = vsel %vm51_vm0, %v46_v11, 0.0 }
  0x2b   :  { %v54_v16 = vadd.f32 %v53_v13, %v52_v12  ;;  %v75_v20 = vld [vmem:[#allocation7 + $0x38] sm:$0xff]  ;;  %v83_v21 = vsel %vm51_vm0, %v72_v14, 0.0  ;;  %v80_v22 = vadd.f32 %v79_v6, %v78_v9  ;;  %v84_v24 = vsel %vm51_vm0, %v73_v18, 0.0  ;;  %v47_v26 = vld [vmem:[#allocation4 + $0x20] sm:$0xff]  ;;  %v48_v27 = vld [vmem:[#allocation4 + $0x28] sm:$0xff]  ;;  %s522_s1 = smov [#allocation9]  }
  0x2c   :  { %v86_v25 = vsel %vm51_vm0, %v74_v19, 0.0  ;;  %v49_v28 = vld [vmem:[#allocation4 + $0x30] sm:$0xff]  ;;  %v85_v30 = vadd.f32 %v84_v24, %v83_v21  ;;  %v50_v31 = vld [vmem:[#allocation4 + $0x38] sm:$0xff]  ;;  %v59_v32 = vsel %vm51_vm0, %v47_v26, 0.0  ;;  %v60_v33 = vsel %vm51_vm0, %v48_v27, 0.0  ;;  %s356_s10 = sshll.u32 %s522_s1, 4  ;;  %s357_s10 = int_to_ptr.vmem [resolvable:$true] %s356_s10 }
  0x2d   :  { %v56_v29 = vadd.f32 %v55_v17, %v54_v16  ;;  %v82_v34 = vadd.f32 %v81_v15, %v80_v22  ;;  %v88_v35 = vsel %vm51_vm0, %v75_v20, 0.0  ;;  %v61_v36 = vadd.f32 %v60_v33, %v59_v32  ;;  %s464_s12 = scalar_lea.vmem %s357_s10, 16  ;;  %s468_s13 = scalar_lea.vmem %s357_s10, 32 }
  0x2e   :  { %v62_v37 = vsel %vm51_vm0, %v49_v28, 0.0  ;;  %v87_v39 = vadd.f32 %v86_v25, %v85_v30  ;;  %v64_v40 = vsel %vm51_vm0, %v50_v31, 0.0  ;;  %vm146_vm2 = vcmask 7168   ;;  %p465_p2 = scmp.ne.s32.totalorder %s357_s10, %s464_s12  ;;  %p469_p3 = scmp.lt.s32.totalorder %s357_s10, %s357_s10 }
  0x2f   :  { %v58_v38 = vadd.f32 %v57_v23, %v56_v29  ;;  %90 = vst.msk [vmem:[#allocation3] sm:$0xff] %vm51_vm0, %v82_v34  ;;  %v63_v41 = vadd.f32 %v62_v37, %v61_v36  ;;  %vm165_vm3 = vcmask 0   ;;  %vm332_vm4 = vcmask 64512   ;;  %p470_p4 = scmp.lt.s32.totalorder %s468_s13, %s464_s12 }
  0x30   :  { %v89_v42 = vadd.f32 %v88_v35, %v87_v39 }
  0x31   :  { %66 = vst.msk [vmem:[#allocation2] sm:$0xff] %vm51_vm0, %v58_v38  ;;  %v65_v43 = vadd.f32 %v64_v40, %v63_v41  ;;  %p471_p5 = por %p470_p4, %p469_p3 }
  0x32   :  { %91 = vst.msk [vmem:[#allocation3 + $0x8] sm:$0xff] %vm51_vm0, %v89_v42 }
  0x33   :  { %67 = vst.msk [vmem:[#allocation2 + $0x8] sm:$0xff] %vm51_vm0, %v65_v43  ;;  %p472_p6 = pnand %p471_p5, %p465_p2 }
  0x36   :  { %v96_v44 = vld [vmem:[#allocation3] sm:$0xff] }
  0x37   :  { %v98_v45 = vmul.f32 0.25, %v96_v44 }
  0x38   :  { %v92_v46 = vld [vmem:[#allocation2] sm:$0xff] }
  0x39   :  { %v94_v47 = vmul.f32 0.25, %v92_v46  ;;  %v114_v48 = vmul.f32 %v98_v45, %v98_v45  ;;  %v97_v49 = vld [vmem:[#allocation3 + $0x8] sm:$0xff] }
  0x3a   :  { %v99_v51 = vmul.f32 0.25, %v97_v49  ;;  %v93_v52 = vld [vmem:[#allocation2 + $0x8] sm:$0xff] }
  0x3b   :  { %v100_v50 = vmul.f32 %v94_v47, %v94_v47  ;;  %v116_v53 = vsel %vm51_vm0, %v114_v48, 0.0  ;;  %v95_v54 = vmul.f32 0.25, %v93_v52 }
  0x3c   :  { %117 = vadd.xlane.f32.xlu0 %v116_v53  ;;  %v115_v56 = vmul.f32 %v99_v51, %v99_v51 }
  0x3d   :  { %v102_v55 = vsel %vm51_vm0, %v100_v50, 0.0  ;;  %v101_v57 = vmul.f32 %v95_v54, %v95_v54 }
  0x3e   :  { %103 = vadd.xlane.f32.xlu1 %v102_v55  ;;  %v119_v58 = vsel %vm51_vm0, %v115_v56, 0.0 }
  0x3f   :  { %v105_v59 = vsel %vm51_vm0, %v101_v57, 0.0 }
  0x40   :  { %120 = vadd.xlane.f32.xlu0 %v119_v58 }
  0x42   :  { %106 = vadd.xlane.f32.xlu1 %v105_v59 }
  0xc9   :  { %v118_v61 = vpop.xlane.xlu0 %117 }
  0xca   :  { %v122_v62 = vmax.f32 %v118_v61, 1e-24 }
  0xcb   :  { %v104_v63 = vpop.xlane.xlu1 %103 }
  0xcc   :  { %v108_v0 = vmax.f32 %v104_v63, 1e-24  ;;  %412 = vrsqrt.f32 %v122_v62 }
  0xcd   :  { %v121_v1 = vpop.xlane.xlu0 %120 }
  0xce   :  { %414 = vrsqrt.f32 %v108_v0  ;;  %v123_v2 = vmax.f32 %v121_v1, 1e-24 }
  0xcf   :  { %v107_v3 = vpop.xlane.xlu1 %106 }
  0xd0   :  { %v109_v4 = vmax.f32 %v107_v3, 1e-24  ;;  %416 = vrsqrt.f32 %v123_v2 }
  0xd2   :  { %418 = vrsqrt.f32 %v109_v4 }
  0xd6   :  { %v413_v5 = vpop.eup %412 }
  0xd7   :  { %v126_v7 = vmul.f32 %v413_v5, %v98_v45 }
  0xd8   :  { %v415_v6 = vpop.eup %414 }
  0xd9   :  { %v112_v8 = vmul.f32 %v415_v6, %v94_v47  ;;  %130 = vst.msk [vmem:[#allocation3] sm:$0xff] %vm51_vm0, %v126_v7 }
  0xda   :  { %v417_v9 = vpop.eup %416 }
  0xdb   :  { %128 = vst.msk [vmem:[#allocation2] sm:$0xff] %vm51_vm0, %v112_v8  ;;  %v127_v11 = vmul.f32 %v417_v9, %v99_v51 }
  0xdc   :  { %v419_v10 = vpop.eup %418 }
  0xdd   :  { %v113_v12 = vmul.f32 %v419_v10, %v95_v54  ;;  %131 = vst.msk [vmem:[#allocation3 + $0x8] sm:$0xff] %vm51_vm0, %v127_v11 }
  0xdf   :  { %129 = vst.msk [vmem:[#allocation2 + $0x8] sm:$0xff] %vm51_vm0, %v113_v12 }
  0xe0   :  { %v134_v13 = vld [vmem:[#allocation3] sm:$0xff] }
  0xe1   :  { %389 = vmatpush3.xpose.msk.msra.mxu0 %vm51_vm0, %v134_v13 }
  0xe2   :  { %v132_v14 = vld [vmem:[#allocation2] sm:$0xff] }
  0xe3   :  { %v136_v15 = vmul.f32 %v134_v13, %v132_v14 }
  0xe4   :  { %391 = vmatmul.mubr.msk.f32.vlgmr.msra.gmra.mrb[0].mxu0 %vm51_vm0, %v132_v14  ;;  %v135_v17 = vld [vmem:[#allocation3 + $0x8] sm:$0xff] }
  0xe5   :  { %v138_v16 = vsel %vm51_vm0, %v136_v15, 0.0  ;;  %394 = vmatpush3.xpose.msk.msra.mxu1 %vm51_vm0, %v135_v17 }
  0xe6   :  { %139 = vadd.xlane.f32.xlu0 %v138_v16  ;;  %v133_v18 = vld [vmem:[#allocation2 + $0x8] sm:$0xff] }
  0xe7   :  { %v137_v19 = vmul.f32 %v135_v17, %v133_v18 }
  0xe8   :  { %396 = vmatmul.mubr.msk.f32.vlgmr.msra.gmra.mrb[0].mxu1 %vm51_vm0, %v133_v18 }
  0xe9   :  { %v141_v20 = vsel %vm51_vm0, %v137_v19, 0.0 }
  0xea   :  { %142 = vadd.xlane.f32.xlu1 %v141_v20 }
 0x173   :  { %v140_v21 = vpop.xlane.xlu0 %139 }
 0x174   :  { %v144_v22 = vmul.f32 %v140_v21, %v140_v21 }
 0x176   :  { %v161_v24 = vrot.slane %v144_v22, 7  ;;  %v147_v27 = vsel %vm146_vm2, %v144_v22, 0.0 }
 0x177   :  { %v143_v23 = vpop.xlane.xlu1 %142 }
 0x178   :  { %v145_v25 = vmul.f32 %v143_v23, %v143_v23  ;;  %v166_v30 = vsel %vm165_vm3, %v161_v24, 0.0 }
 0x17a   :  { %v162_v26 = vrot.slane %v145_v25, 7  ;;  %v148_v28 = vsel %vm146_vm2, %v145_v25, 0.0 }
 0x17b   :  { %v149_v29 = vadd.f32 %v148_v28, %v147_v27 }
 0x17c   :  { %v167_v31 = vsel %vm165_vm3, %v162_v26, 0.0 }
 0x17d   :  { %150 = vadd.xlane.f32.xlu0 %v149_v29  ;;  %v168_v32 = vadd.f32 %v167_v31, %v166_v30 }
 0x17f   :  { %169 = vadd.xlane.f32.xlu1 %v168_v32 }
 0x1b7   :  { %v250_v33 = vpop.f32.mrb[0].mxu0 }
 0x1b8   :  { %v392_v34 = vpop.f32.mrb[1].mxu0  ;;  %v330_v35 = vmul.f32 %v250_v33, %v250_v33 }
 0x1ba   :  { %v333_v39 = vsel %vm332_vm4, %v330_v35, 0.0 }
 0x1bb   :  { %v326_v36 = vpop.f32.mrb[0].mxu1 }
 0x1bc   :  { %v331_v37 = vmul.f32 %v326_v36, %v326_v36  ;;  %v397_v38 = vpop.f32.mrb[1].mxu1 }
 0x1be   :  { %v334_v40 = vsel %vm332_vm4, %v331_v37, 0.0 }
 0x1bf   :  { %v335_v41 = vadd.f32 %v334_v40, %v333_v39 }
 0x1c1   :  { %336 = vadd.xlane.f32.xlu0 %v335_v41 }
 0x20a   :  { %v151_v42 = vpop.xlane.xlu0 %150 }
 0x20b   :  { %v152_v43 = vrot.slane %v151_v42, 4 }
 0x20c   :  { %v170_v44 = vpop.xlane.xlu1 %169 }
 0x20d   :  { %v153_v45 = vadd.f32 %v152_v43, %v151_v42  ;;  %v171_v46 = vrot.slane %v170_v44, 4 }
 0x20f   :  { %v154_v47 = vrot.slane %v153_v45, 2  ;;  %v172_v48 = vadd.f32 %v171_v46, %v170_v44 }
 0x211   :  { %v173_v49 = vrot.slane %v172_v48, 2  ;;  %v155_v50 = vadd.f32 %v154_v47, %v153_v45 }
 0x213   :  { %v174_v51 = vadd.f32 %v173_v49, %v172_v48  ;;  %v156_v52 = vrot.slane %v155_v50, 1 }
 0x215   :  { %v157_v53 = vadd.f32 %v156_v52, %v155_v50  ;;  %v175_v54 = vrot.slane %v174_v51, 1 }
 0x217   :  { %398 = vpush %v157_v53  ;;  %v176_v55 = vadd.f32 %v175_v54, %v174_v51 }
 0x219   :  { %400 = vpush %v176_v55 }
 0x248   :  { %s399_s11 = spop %398 }
 0x249   :  { %v345_v56 = vstv %s399_s11 }
 0x24a   :  { %346 = vst.msk [vmem:[#allocation9] sm:$0x1] %vm165_vm3, %v345_v56 }
 0x24b   :  { %475 = shalt.err (!%p472_p6)
}
 0x24c   :  { %s476_s16 = scalar_lea.hbm %s632_s2, 16 }
 0x24d   :  { %p477_p7 = scmp.ne.s32.totalorder %s632_s2, %s476_s16  ;;  %p480_p8 = scmp.lt.u32.totalorder %s476_s16, %s632_s2 }
 0x24f   :  { %p482_p9 = pnand %p480_p8, %p477_p7 }
 0x251   :  { %485 = shalt.err (!%p482_p9)
}
 0x252   :  { %359 = dma.vmem_to_hbm [thread:$0]  %s357_s10, 16, %s632_s2, [#allocation6]   ;;  %v337_v57 = vpop.xlane.xlu0 %336 }
 0x253   :  { %v338_v58 = vrot.slane %v337_v57, 4  ;;  %s401_s23 = spop %400  ;;  %s523_s24 = smov [#allocation10]  }
 0x254   :  { %s366_s25 = sshll.u32 %s523_s24, 4  ;;  %s367_s25 = int_to_ptr.vmem [resolvable:$true] %s366_s25 }
 0x255   :  { %v339_v59 = vadd.f32 %v338_v58, %v337_v57  ;;  %s486_s28 = scalar_lea.vmem %s367_s25, 16  ;;  %s490_s2 = scalar_lea.vmem %s367_s25, 32 }
 0x256   :  { %p487_p10 = scmp.ne.s32.totalorder %s367_s25, %s486_s28  ;;  %p491_p11 = scmp.lt.s32.totalorder %s367_s25, %s367_s25 }
 0x257   :  { %v340_v60 = vrot.slane %v339_v59, 2  ;;  %p492_p12 = scmp.lt.s32.totalorder %s490_s2, %s486_s28 }
 0x259   :  { %v341_v61 = vadd.f32 %v340_v60, %v339_v59  ;;  %p493_p13 = por %p492_p12, %p491_p11 }
 0x25b   :  { %v342_v62 = vrot.slane %v341_v61, 1  ;;  %p494_p0 = pnand %p493_p13, %p487_p10 }
 0x25d   :  { %v343_v63 = vadd.f32 %v342_v62, %v341_v61 }
 0x25f   :  { %402 = vpush %v343_v63 }
 0x290   :  { %s403_s26 = spop %402 }
 0x291   :  { %s347_s27 = ssub.f32 %s403_s26, %s401_s23 }
 0x293   :  { %v348_v0 = vstv %s347_s27 }
 0x294   :  { %349 = vst.msk [vmem:[#allocation10] sm:$0x1] %vm165_vm3, %v348_v0 }
 0x295   :  { %497 = shalt.err (!%p494_p0)
}
 0x296   :  { %s498_s4 = scalar_lea.hbm %s633_s3, 16 }
 0x297   :  { %p499_p1 = scmp.ne.s32.totalorder %s633_s3, %s498_s4  ;;  %p502_p2 = scmp.lt.u32.totalorder %s498_s4, %s633_s3 }
 0x299   :  { %p504_p3 = pnand %p502_p2, %p499_p1 }
 0x29b   :  { %507 = shalt.err (!%p504_p3)
}
 0x29c   :  { %369 = dma.vmem_to_hbm [thread:$0]  %s367_s25, 16, %s633_s3, [#allocation11]  }
 0x29d   :  { %512 = dma.done.wait [#allocation6], 16  }
 0x29e   :  { %513 = vsyncadd [#allocation6], 4294967280 }
 0x29f   :  { %514 = dma.done.wait [#allocation11], 16  }
 0x2a0   :  { %515 = vsyncadd [#allocation11], 4294967280 }
 0x2a1   :  { %376 = vsyncpa [#allocation5], 1 }
 0x2a2   :  { %377 = vsyncpa [#allocation8], 1 }
 0x2a3   :  { %378 = vsyncpa [#allocation6], 1 }
 0x2a4   :  { %379 = vsyncpa [#allocation11], 1 }

</bundles_post_ra>
